<compile_context>
chip_gen: v6e
topology: v6e:2x2x1
jax: 0.10.0
libtpu: 0.0.40
codegen_flags: <defaults>
</compile_context>

<pallas_src>
import math

import jax
import jax.numpy as jnp
from jax.experimental import pallas as pl
from jax.experimental.pallas import tpu as pltpu

_MIB = 1024 * 1024


def _sublane_multiple(dtype) -> int:
    """Second-minor tile multiple for this dtype (8 for 32-bit, 16 bf16, 32 int8)."""
    bits = jnp.dtype(dtype).itemsize * 8
    return max(8, 256 // bits)


def _vmem_capacity_bytes() -> int:
    """Per-core VMEM capacity; conservative (v7x-sized) default if unknown."""
    try:
        info = pltpu.get_tpu_info()
        cap = int(getattr(info, "vmem_capacity_bytes", 0))
        if cap > 0:
            return cap
    except Exception:
        pass
    return 64 * _MIB


def _mc_expand_kernel(x_ref, o_ref):
    # x_ref: (tR, tC) input tile; same block index across the innermost MC grid
    #        axis -> Pallas skips re-fetching it from HBM.
    # o_ref: (f, tR, tC) output block covering f consecutive MC slices.
    x = x_ref[...]
    for m in range(o_ref.shape[0]):  # f is small & static -> unrolled stores
        o_ref[m] = x


# ---------------------------------------------------------------------------
# One-time runtime probe: is pipeline_mode=pl.Buffered(1) accepted on an input
# BlockSpec?  (Saves one input-tile buffer of VMEM; harmless if unsupported.)
# ---------------------------------------------------------------------------
_BUFFERED_INPUT_OK = None


def _buffered_input_supported() -> bool:
    global _BUFFERED_INPUT_OK
    if _BUFFERED_INPUT_OK is None:
        try:
            x = jnp.arange(8 * 128, dtype=jnp.float32).reshape(8, 128)
            out = pl.pallas_call(
                _mc_expand_kernel,
                out_shape=jax.ShapeDtypeStruct((2, 8, 128), jnp.float32),
                grid=(1, 1, 2),
                in_specs=[
                    pl.BlockSpec((8, 128), lambda i, j, mc: (i, j),
                                 pipeline_mode=pl.Buffered(1)),
                ],
                out_specs=pl.BlockSpec((1, 8, 128), lambda i, j, mc: (mc, i, j)),
            )(x)
            out = jax.block_until_ready(out)
            _BUFFERED_INPUT_OK = bool(jnp.array_equal(out[0], x)) and bool(
                jnp.array_equal(out[1], x))
        except Exception:
            _BUFFERED_INPUT_OK = False
    return _BUFFERED_INPUT_OK


def _plan_tiles(rows, cols, dtype, num_MC):
    """Choose (t_rows, t_cols, mc_fold, vmem_limit_bytes); None if infeasible."""
    itemsize = jnp.dtype(dtype).itemsize
    sub = _sublane_multiple(dtype)
    cap = _vmem_capacity_bytes()

    # Buffer budget (leave headroom for Mosaic scratch / metadata):
    #   v7x (64 MiB)  -> ~48 MiB,  v5e/v6e (128 MiB) -> ~88 MiB.
    budget = max(min(cap - 16 * _MIB, 88 * _MIB), 24 * _MIB)
    max_tile_bytes = 8 * _MIB  # per-tile cap (review: 8-12 MiB on v7x)

    # Column (lane) tile: lane-dense multiple of 128 when possible, else full
    # extent (a block dim equal to the full array dim is always legal).
    if cols % 128 == 0:
        t_cols = min(cols, 2048)
    else:
        t_cols = cols

    row_bytes = t_cols * itemsize
    t_rows_cap = max(sub, (max_tile_bytes // max(row_bytes, 1)) // sub * sub)
    t_rows = rows if rows <= t_rows_cap else t_rows_cap
    tile_bytes = t_rows * t_cols * itemsize

    # VMEM model: 2x input tile (double buffered) + 2x f x output tile.
    def fits(f):
        return 2 * tile_bytes + 2 * f * tile_bytes <= budget

    # Shrink the row tile until at least f=1 fits; give up if it never does
    # (huge non-128-multiple last dim) -> caller falls back to broadcast_to.
    while t_rows > sub and not fits(1):
        t_rows = max(sub, ((t_rows // 2) // sub) * sub)
        tile_bytes = t_rows * t_cols * itemsize
    if not fits(1):
        return None

    # MC fold factor: write f replicas per grid step.
    f = 1
    for cand in (4, 2):
        if num_MC % cand == 0 and fits(cand):
            f = cand
            break

    # Keep >= 2 grid steps when possible so both TensorCores (v7x) get work.
    gr = -(-rows // t_rows)
    gc = -(-cols // t_cols)
    while f > 1 and gr * gc * (num_MC // f) < 2:
        f //= 2

    need = 2 * tile_bytes + 2 * f * tile_bytes
    vmem_limit = int(min(cap - 8 * _MIB, max(32 * _MIB, need + 4 * _MIB)))
    return t_rows, t_cols, f, vmem_limit


def _pallas_mc_expand_2d(x2, num_MC, plan):
    """Replicate a 2-D array num_MC times along a new leading axis via Pallas."""
    t_rows, t_cols, f, vmem_limit = plan
    rows, cols = x2.shape
    grid = (-(-rows // t_rows), -(-cols // t_cols), num_MC // f)

    if _buffered_input_supported():
        # Single input buffer: it is only re-fetched when (i, j) changes.
        in_spec = pl.BlockSpec((t_rows, t_cols), lambda i, j, mc: (i, j),
                               pipeline_mode=pl.Buffered(1))
    else:
        in_spec = pl.BlockSpec((t_rows, t_cols), lambda i, j, mc: (i, j))

    return pl.pallas_call(
        _mc_expand_kernel,
        out_shape=jax.ShapeDtypeStruct((num_MC, rows, cols), x2.dtype),
        grid=grid,
        in_specs=[in_spec],
        out_specs=pl.BlockSpec((f, t_rows, t_cols), lambda i, j, mc: (mc, i, j)),
        compiler_params=pltpu.CompilerParams(
            # Every grid step writes a distinct output block -> all axes are
            # safely parallel (lets the MC axis shard across TensorCores).
            dimension_semantics=("parallel", "parallel", "parallel"),
            vmem_limit_bytes=vmem_limit,
        ),
    )(x2)


def mc_expansion_layer(x, num_MC=1, input_dim=2, *, use_pallas=None):
    """JAX/Pallas equivalent of MC_ExpansionLayer.forward."""
    if x.ndim == input_dim + 1:
        # Pass-through (matches PyTorch: leading dim is NOT checked vs num_MC).
        return x
    if x.ndim != input_dim:
        raise ValueError(
            f"Input.dim()={x.ndim}, but should be either {input_dim} "
            f"and expanded or {input_dim + 1}"
        )

    out_shape = (num_MC,) + tuple(x.shape)
    itemsize = jnp.dtype(x.dtype).itemsize
    n = int(x.size)

    # Lane-dense 2-D repack when a cheap row-major reshape exists.
    if x.ndim >= 1:
        rows = math.prod(x.shape[:-1]) if x.ndim > 1 else 1
        cols = x.shape[-1]
    else:
        rows, cols = 1, 1
    lane_dense = cols % 128 == 0 and cols > 0
    if not lane_dense and n > 0 and n % 128 == 0:
        cols = 128
        while cols * 2 <= 2048 and n % (cols * 2) == 0:
            cols *= 2
        rows = n // cols
        lane_dense = True

    if use_pallas is None:
        # Pallas only pays off for materialized, lane-dense, >=1 MiB outputs;
        # otherwise a zero-copy broadcast view (XLA-fusable) wins.
        use_pallas = lane_dense and (n * itemsize * num_MC >= (1 << 20))

    if not use_pallas or n == 0:
        return jnp.broadcast_to(x[None], out_shape)

    plan = _plan_tiles(rows, cols, x.dtype, num_MC)
    if plan is None:
        # Tile cannot fit VMEM (huge non-128-multiple last dim) -> safe fallback.
        return jnp.broadcast_to(x[None], out_shape)

    x2 = x.reshape(rows, cols)
    out2 = _pallas_mc_expand_2d(x2, num_MC, plan)
    return out2.reshape(out_shape)


if __name__ == "__main__":
    key = jax.random.PRNGKey(0)
    k1, k2, k3, k4 = jax.random.split(key, 4)
    num_MC = 4

    # Case 1: 2-D input, small & non-lane-dense (F=32), forced through Pallas
    # (exercises the flatten-to-lane-dense reshape path: 8*32 -> (1, 256)).
    x2d = jax.random.normal(k1, (8, 32), dtype=jnp.float32)
    out1 = jax.block_until_ready(
        mc_expansion_layer(x2d, num_MC=num_MC, input_dim=2, use_pallas=True))
    ref1 = jnp.broadcast_to(x2d[None], (num_MC,) + x2d.shape)
    assert out1.shape == ref1.shape and out1.dtype == x2d.dtype
    assert bool(jnp.array_equal(out1, ref1))

    # Case 2: 2-D input, already lane-dense (F multiple of 128) -> tiled copy
    # with the MC fold (output block carries multiple MC slices per step).
    xl = jax.random.normal(k2, (256, 512), dtype=jnp.float32)
    out2 = jax.block_until_ready(
        mc_expansion_layer(xl, num_MC=num_MC, input_dim=2, use_pallas=True))
    ref2 = jnp.broadcast_to(xl[None], (num_MC,) + xl.shape)
    assert out2.shape == ref2.shape and bool(jnp.array_equal(out2, ref2))

    # Case 3: x.ndim == input_dim + 1 -> pass-through.
    x3d = jax.random.normal(k3, (num_MC, 8, 32), dtype=jnp.float32)
    out3 = jax.block_until_ready(mc_expansion_layer(x3d, num_MC=num_MC, input_dim=2))
    assert out3.shape == x3d.shape and bool(jnp.array_equal(out3, x3d))

    # Case 4: automatic small-input fast path (zero-copy broadcast view).
    out4 = jax.block_until_ready(mc_expansion_layer(x2d, num_MC=num_MC, input_dim=2))
    assert bool(jnp.array_equal(out4, ref1))

    # Case 5: bf16 (sublane multiple 16), num_MC=2, forced through Pallas.
    xb = jax.random.normal(k4, (64, 256), dtype=jnp.bfloat16)
    out5 = jax.block_until_ready(
        mc_expansion_layer(xb, num_MC=2, input_dim=2, use_pallas=True))
    ref5 = jnp.broadcast_to(xb[None], (2,) + xb.shape)
    assert out5.shape == ref5.shape and out5.dtype == xb.dtype
    assert bool(jnp.array_equal(out5, ref5))

    print("KERNEL_OK")
</pallas_src>

<mosaic_0001>
module attributes {stable_mosaic.version = 11 : i64} {
  func.func @_mc_expand_kernel(%arg0: i32, %arg1: i32, %arg2: i32, %arg3: memref<8x128xf32, #tpu.memory_space<vmem>>, %arg4: memref<1x8x128xf32, #tpu.memory_space<vmem>>) attributes {dimension_semantics = [#tpu.dimension_semantics<arbitrary>, #tpu.dimension_semantics<arbitrary>, #tpu.dimension_semantics<arbitrary>], iteration_bounds = array<i64: 1, 1, 2>, scalar_prefetch = 0 : i64, scratch_operands = 0 : i64, tpu.core_type = #tpu.core_type<tc>, window_params = [{pipeline_mode = #tpu.pipeline_mode<synchronous>, transform_indices = @transform_0, window_bounds = array<i64: 8, 128>}, {transform_indices = @transform_1, window_bounds = array<i64: 1, 8, 128>}]} {
    %c0 = arith.constant 0 : index
    %c0_0 = arith.constant 0 : index
    %0 = vector.load %arg3[%c0, %c0_0] : memref<8x128xf32, #tpu.memory_space<vmem>>, vector<8x128xf32>
    %c0_1 = arith.constant 0 : index
    %c0_2 = arith.constant 0 : index
    %c0_3 = arith.constant 0 : index
    %1 = vector.load %arg4[%c0_1, %c0_2, %c0_3] : memref<1x8x128xf32, #tpu.memory_space<vmem>>, vector<1x8x128xf32>
    %2 = vector.shape_cast %1 : vector<1x8x128xf32> to vector<8x128xf32>
    %3 = vector.shape_cast %0 : vector<8x128xf32> to vector<1x8x128xf32>
    tpu.vector_store %arg4[%c0_1, %c0_2, %c0_3], %3 {strides = array<i32>} : memref<1x8x128xf32, #tpu.memory_space<vmem>>, vector<1x8x128xf32>,
    return
  }
  func.func @transform_0(%arg0: i32, %arg1: i32, %arg2: i32) -> (i32, i32) {
    %c0_i32 = arith.constant 0 : i32
    return %arg0, %arg1 : i32, i32
  }
  func.func @transform_1(%arg0: i32, %arg1: i32, %arg2: i32) -> (i32, i32, i32) {
    %c0_i32 = arith.constant 0 : i32
    return %arg2, %arg0, %arg1 : i32, i32, i32
  }
}

module attributes {stable_mosaic.version = 11 : i64} {
  func.func @_mc_expand_kernel(%arg0: i32, %arg1: i32, %arg2: i32, %arg3: memref<1x256xf32, #tpu.memory_space<vmem>>, %arg4: memref<2x1x256xf32, #tpu.memory_space<vmem>>) attributes {dimension_semantics = [#tpu.dimension_semantics<parallel>, #tpu.dimension_semantics<parallel>, #tpu.dimension_semantics<parallel>], iteration_bounds = array<i64: 1, 1, 2>, scalar_prefetch = 0 : i64, scratch_operands = 0 : i64, tpu.core_type = #tpu.core_type<tc>, window_params = [{transform_indices = @transform_0, window_bounds = array<i64: 1, 256>}, {transform_indices = @transform_1, window_bounds = array<i64: 2, 1, 256>}]} {
    %c0 = arith.constant 0 : index
    %c0_0 = arith.constant 0 : index
    %0 = vector.load %arg3[%c0, %c0_0] : memref<1x256xf32, #tpu.memory_space<vmem>>, vector<1x256xf32>
    %c0_1 = arith.constant 0 : index
    %c0_2 = arith.constant 0 : index
    %c0_3 = arith.constant 0 : index
    %1 = vector.load %arg4[%c0_1, %c0_2, %c0_3] : memref<2x1x256xf32, #tpu.memory_space<vmem>>, vector<1x1x256xf32>
    %2 = vector.shape_cast %1 : vector<1x1x256xf32> to vector<1x256xf32>
    %3 = vector.shape_cast %0 : vector<1x256xf32> to vector<1x1x256xf32>
    tpu.vector_store %arg4[%c0_1, %c0_2, %c0_3], %3 {strides = array<i32>} : memref<2x1x256xf32, #tpu.memory_space<vmem>>, vector<1x1x256xf32>,
    %c1 = arith.constant 1 : index
    %c0_4 = arith.constant 0 : index
    %c0_5 = arith.constant 0 : index
    %4 = vector.load %arg4[%c1, %c0_4, %c0_5] : memref<2x1x256xf32, #tpu.memory_space<vmem>>, vector<1x1x256xf32>
    %5 = vector.shape_cast %4 : vector<1x1x256xf32> to vector<1x256xf32>
    %6 = vector.shape_cast %0 : vector<1x256xf32> to vector<1x1x256xf32>
    tpu.vector_store %arg4[%c1, %c0_4, %c0_5], %6 {strides = array<i32>} : memref<2x1x256xf32, #tpu.memory_space<vmem>>, vector<1x1x256xf32>,
    return
  }
  func.func @transform_0(%arg0: i32, %arg1: i32, %arg2: i32) -> (i32, i32) {
    %c0_i32 = arith.constant 0 : i32
    return %arg0, %arg1 : i32, i32
  }
  func.func @transform_1(%arg0: i32, %arg1: i32, %arg2: i32) -> (i32, i32, i32) {
    %c0_i32 = arith.constant 0 : i32
    return %arg2, %arg0, %arg1 : i32, i32, i32
  }
}

</mosaic_0001>

<bundles_post_ra>
// kernel: tpu_custom_call.1
= control target key start
LH: loop header
LB: loop body
LE: loop exit
PB: predicated region body
PF: predicated region fallthrough
CT: control target
= control target key end

     0   :  { %6 = vsyncpa [#allocation3], 0  ;;  %s552_s0 = inlined_call_operand.hbm [shape: f32[8,128], index: 0, kind: input, shape index: {}]   ;;  %s553_s1 = inlined_call_operand.hbm [shape: f32[2,8,128], index: 1, kind: output, shape index: {}]  }
   0x1   :  { %7 = vsyncpa [#allocation4], 0 }
   0x2   :  { %9 = vsyncpa [#allocation4 + $0x1], 0  ;;  %s431_s6 = smov 0   ;;  %s433_s7 = smov 0  }
   0x3   :  { %s435_s8 = smov 0   ;;  %s437_s9 = smov 0  }
   0x4   :  { %s439_s10 = smov 0   ;;  %s441_s11 = smov 0  }
   0x5 LB: > { %s234_s12 = sadd.s32 4294967295, %s417_s11   ;;  %s235_s13 = sadd.s32 4294967294, %s417_s11   ;;  %s417_s11 = sphi %s441_s11, %s15_s11   ;;  %s413_s10 = sphi %s439_s10, %s562_s10   ;;  %s409_s9 = sphi %s437_s9, %s561_s9   ;;  %s405_s8 = sphi %s435_s8, %s560_s8   ;;  %s401_s7 = sphi %s433_s7, %s559_s7   ;;  %s397_s6 = sphi %s431_s6, %s558_s6  }
   0x6   : > { %s27_s14 = sadd.s32 1, %s413_s10  ;;  %s73_s15 = sadd.s32 1, %s405_s8 }
   0x7   : > { %p28_p0 = scmp.ge.s32.totalorder %s27_s14, 2  ;;  %p83_p1 = scmp.ne.s32.totalorder %s405_s8, %s401_s7 }
   0x8   : > { %p84_p2 = scmp.eq.s32.totalorder %s234_s12, 1  ;;  %p89_p3 = scmp.ne.s32.totalorder %s401_s7, %s397_s6 }
   0x9   : > { %s564_s14 = smov (%p28_p0, %s27_s14), 0  ;;  %p90_p5 = scmp.eq.s32.totalorder %s235_s13, 1 }
   0xa   : > { %p471_p4 = por %p84_p2, %p83_p1  ;;  %s66_s17 = ssub.s32 %s413_s10, %s564_s14 }
   0xb   : > { %p236_p6 = scmp.ge.s32.totalorder %s417_s11, 1  ;;  %p71_p7 = scmp.eq.s32.totalorder %s66_s17, 0 }
   0xc   : > { %p478_p8 = por %p90_p5, %p89_p3  ;;  %p97_p9 = scmp.lt.s32.totalorder %s417_s11, 3 }
   0xd   : > { %s484_s19 = scalar_select %p71_p7, %s405_s8, %s73_s15  }
   0xe   : > { %p486_p10 = pnand %p236_p6, %p97_p9  ;;  %p490_p11 = scmp.eq.s32.totalorder %s234_s12, 0 }
   0xf   : > { %s419_s22 = smov [#allocation2]  }
  0x10   : > { %p251_p12 = pneg %p486_p10  ;;  %s113_s23 = sshll.u32 %s419_s22, 4  ;;  %s114_s23 = int_to_ptr.vmem [resolvable:$true] %s113_s23 }
  0x11   : > { %s322_s24 = scalar_lea.vmem %s114_s23, 128  ;;  %p330_p5 = scmp.lt.s32.totalorder %s114_s23, %s114_s23 }
  0x12   : > { %p252_p13 = pnand %p490_p11, %p251_p12  ;;  %p323_p1 = scmp.ne.s32.totalorder %s114_s23, %s322_s24 }
  0x13   : > { %p331_p6 = scmp.lt.s32.totalorder %s322_s24, %s322_s24 }
  0x14   : > { %p313_p0 = pneg %p252_p13 }
  0x15   : > { %p332_p7 = por %p331_p6, %p330_p5 }
  0x16   : > { %p325_p2 = pnand %p323_p1, %p313_p0 }
  0x18   : > { %p326_p3 = pneg %p325_p2 }
  0x1a   : > { %p333_p9 = pnand %p332_p7, %p326_p3 }
  0x1c   : > { %336 = shalt.err (!%p333_p9)
}
  0x1d   : > { %254 = dma.hbm_to_vmem [thread:$0]  (!%p252_p13), %s552_s0, 128, %s114_s23, [#allocation3]  }
  0x1e   : > { %126 = sbr.rel (%p486_p10) target bundleno = 61 (0x3d), region = 24 }
  0x23   : > { %388 = dma.done.wait (%p490_p11), [#allocation3], 128  }
  0x24   : > { %390 = vsyncadd (%p490_p11), [#allocation3], 4294967168  ;;  %s138_s27 = sand.u32 1, %s401_s7   ;;  %s242_s2 = sshll.u32 %s409_s9, 7  ;;  %v141_v0 = vld [vmem:[#allocation2] sm:$0xff] }
  0x25   : > { %s240_s28 = sshll.u32 %s138_s27, 3  ;;  %s157_s5 = scalar_lea.hbm %s553_s1, %s242_s2 }
  0x26   : > { %s140_s29 = scalar_lea.vmem [#allocation5], %s240_s28  ;;  %s144_s12 = scalar_lea.sflag [#allocation4], %s138_s27 }
  0x27   : > { %s159_s30 = sshll.u32 %s140_s29, 4  ;;  %142 = vst [vmem:[%s140_s29] sm:$0xff] %v141_v0  ;;  %s420_s15 = smov [#allocation5]   ;;  %s509_s30 = int_to_ptr.vmem [resolvable:$true] %s159_s30 }
  0x28   : > { %s337_s13 = scalar_lea.vmem %s509_s30, 128  ;;  %s341_s17 = sshll.u32 %s420_s15, 4  ;;  %s342_s17 = int_to_ptr.vmem [resolvable:$false] %s341_s17 }
  0x29   : > { %p338_p10 = scmp.ne.s32.totalorder %s509_s30, %s337_s13  ;;  %s343_s9 = scalar_lea.vmem %s342_s17, 256 }
  0x2a   : > { %p344_p13 = scmp.lt.s32.totalorder %s509_s30, %s342_s17  ;;  %p345_p0 = scmp.lt.s32.totalorder %s343_s9, %s337_s13 }
  0x2b   : > { %p339_p11 = pnand %p338_p10, %p471_p4 }
  0x2c   : > { %p346_p1 = por %p345_p0, %p344_p13 }
  0x2d   : > { %p340_p12 = pneg %p339_p11 }
  0x2f   : > { %p347_p2 = pnand %p346_p1, %p340_p12 }
  0x31   : > { %350 = shalt.err (!%p347_p2)
}
  0x32   : > { %s351_s20 = scalar_lea.hbm %s157_s5, 128  ;;  %s355_s23 = scalar_lea.hbm %s553_s1, 256 }
  0x33   : > { %p352_p3 = scmp.ne.s32.totalorder %s157_s5, %s351_s20  ;;  %p356_p7 = scmp.lt.s32.totalorder %s157_s5, %s553_s1 }
  0x34   : > { %p357_p9 = scmp.lt.s32.totalorder %s355_s23, %s351_s20 }
  0x35   : > { %p353_p5 = pnand %p352_p3, %p471_p4 }
  0x36   : > { %p358_p10 = por %p357_p9, %p356_p7 }
  0x37   : > { %p354_p6 = pneg %p353_p5 }
  0x39   : > { %p359_p11 = pnand %p358_p10, %p354_p6 }
  0x3b   : > { %362 = shalt.err (!%p359_p11)
}
  0x3c   : > { %249 = dma.vmem_to_hbm [thread:$0]  (%p471_p4), %s509_s30, 128, %s157_s5, %s144_s12  }
  0x3d PF: > { %p261_p12 = scmp.ge.s32.totalorder %s417_s11, 2  ;;  %s171_s26 = sand.u32 1, %s397_s6  }
  0x3e   : > { %s172_s27 = scalar_lea.sflag [#allocation4], %s171_s26 }
  0x3f   : > { %p256_p13 = pnand %p261_p12, %p478_p8 }
  0x41   : > { %p257_p0 = pneg %p256_p13 }
  0x43   : > { %392 = dma.done.wait (%p257_p0), %s172_s27, 128  }
  0x44   : > { %394 = vsyncadd (%p257_p0), %s172_s27, 4294967168  ;;  %s15_s11 = sadd.s32 1, %s417_s11   ;;  %s558_s6 = smov %s401_s7 }
  0x45   : > { %p12_p1 = scmp.ge.s32.totalorder %s15_s11, 4   ;;  %s559_s7 = smov %s405_s8 }
  0x46   : > { %s560_s8 = smov %s484_s19  ;;  %s561_s9 = smov %s413_s10 }
  0x47   : > { %s562_s10 = smov %s564_s14  ;;  %14 = sbr.rel (!%p12_p1) target bundleno = 5 (0x5), region = 62 }
  0x4c   :  { %177 = vsyncpa [#allocation3], 1 }
  0x4d   :  { %179 = vsyncpa [#allocation3 + $0x1], 1 }
  0x4e   :  { %180 = vsyncpa [#allocation4], 1 }
  0x4f   :  { %182 = vsyncpa [#allocation4 + $0x1], 1 }

// kernel: tpu_custom_call.1
= control target key start
LH: loop header
LB: loop body
LE: loop exit
PB: predicated region body
PF: predicated region fallthrough
CT: control target
= control target key end

     0   :  { %6 = vsyncpa [#allocation3], 0  ;;  %s592_s0 = inlined_call_operand.hbm [shape: f32[1,256], index: 0, kind: input, shape index: {}]   ;;  %s593_s1 = inlined_call_operand.hbm [shape: f32[4,1,256], index: 1, kind: output, shape index: {}]  }
   0x1   :  { %7 = vsyncpa [#allocation4], 0 }
   0x2   :  { %9 = vsyncpa [#allocation4 + $0x1], 0  ;;  %s462_s6 = smov 0   ;;  %s464_s7 = smov 0  }
   0x3   :  { %s466_s8 = smov 0   ;;  %s468_s9 = smov 0  }
   0x4   :  { %s470_s10 = smov 0   ;;  %s472_s11 = smov 0  }
   0x5 LB: > { %s256_s12 = sadd.s32 4294967295, %s446_s11   ;;  %s257_s13 = sadd.s32 4294967294, %s446_s11   ;;  %s446_s11 = sphi %s472_s11, %s15_s11   ;;  %s442_s10 = sphi %s470_s10, %s602_s10   ;;  %s438_s9 = sphi %s468_s9, %s601_s9   ;;  %s434_s8 = sphi %s466_s8, %s600_s8   ;;  %s430_s7 = sphi %s464_s7, %s599_s7   ;;  %s426_s6 = sphi %s462_s6, %s598_s6  }
   0x6   : > { %s27_s14 = sadd.s32 1, %s442_s10  ;;  %s73_s15 = sadd.s32 1, %s434_s8 }
   0x7   : > { %p28_p0 = scmp.ge.s32.totalorder %s27_s14, 2  ;;  %p83_p1 = scmp.ne.s32.totalorder %s434_s8, %s430_s7 }
   0x8   : > { %p84_p2 = scmp.eq.s32.totalorder %s256_s12, 1  ;;  %p89_p3 = scmp.ne.s32.totalorder %s430_s7, %s426_s6 }
   0x9   : > { %s604_s14 = smov (%p28_p0, %s27_s14), 0  ;;  %p90_p5 = scmp.eq.s32.totalorder %s257_s13, 1 }
   0xa   : > { %p502_p4 = por %p84_p2, %p83_p1  ;;  %s66_s17 = ssub.s32 %s442_s10, %s604_s14 }
   0xb   : > { %p258_p6 = scmp.ge.s32.totalorder %s446_s11, 1  ;;  %p71_p7 = scmp.eq.s32.totalorder %s66_s17, 0 }
   0xc   : > { %p509_p8 = por %p90_p5, %p89_p3  ;;  %p97_p9 = scmp.lt.s32.totalorder %s446_s11, 3 }
   0xd   : > { %s515_s19 = scalar_select %p71_p7, %s434_s8, %s73_s15  }
   0xe   : > { %p517_p10 = pnand %p258_p6, %p97_p9  ;;  %p521_p11 = scmp.eq.s32.totalorder %s256_s12, 0 }
   0xf   : > { %s448_s22 = smov [#allocation2]  }
  0x10   : > { %p278_p12 = pneg %p517_p10  ;;  %s115_s23 = sshll.u32 %s448_s22, 4  ;;  %s116_s23 = int_to_ptr.vmem [resolvable:$true] %s115_s23 }
  0x11   : > { %s351_s24 = scalar_lea.vmem %s116_s23, 32  ;;  %p359_p5 = scmp.lt.s32.totalorder %s116_s23, %s116_s23 }
  0x12   : > { %p279_p13 = pnand %p521_p11, %p278_p12  ;;  %p352_p1 = scmp.ne.s32.totalorder %s116_s23, %s351_s24 }
  0x13   : > { %p360_p6 = scmp.lt.s32.totalorder %s351_s24, %s351_s24 }
  0x14   : > { %p342_p0 = pneg %p279_p13 }
  0x15   : > { %p361_p7 = por %p360_p6, %p359_p5 }
  0x16   : > { %p354_p2 = pnand %p352_p1, %p342_p0 }
  0x18   : > { %p355_p3 = pneg %p354_p2 }
  0x1a   : > { %p362_p9 = pnand %p361_p7, %p355_p3 }
  0x1c   : > { %365 = shalt.err (!%p362_p9)
}
  0x1d   : > { %281 = dma.hbm_to_vmem [thread:$0]  (!%p279_p13), %s592_s0, 32, %s116_s23, [#allocation3]  }
  0x1e   : > { %128 = sbr.rel (%p517_p10) target bundleno = 62 (0x3e), region = 24 }
  0x23   : > { %417 = dma.done.wait (%p521_p11), [#allocation3], 32  }
  0x24   : > { %419 = vsyncadd (%p521_p11), [#allocation3], 4294967264  ;;  %s140_s27 = sand.u32 1, %s430_s7   ;;  %v147_v0 = vlaneseq  ;;  %s271_s29 = sshll.u32 %s438_s9, 6  ;;  %v146_v1 = vld [vmem:[#allocation2] sm:$0x3] }
  0x25   : > { %s262_s28 = sshll.u32 %s140_s27, 2  ;;  %s543_s5 = scalar_lea.hbm %s593_s1, %s271_s29 }
  0x26   : > { %s142_s30 = scalar_lea.vmem [#allocation5], %s262_s28  ;;  %vm149_vm0 = vcmp.lt.s32.totalorder %v147_v0, 256  ;;  %s547_s12 = scalar_lea.sflag [#allocation4], %s140_s27 }
  0x27   : > { %s173_s2 = sshll.u32 %s142_s30, 4  ;;  %151 = vst.msk [vmem:[%s142_s30] sm:$0x3] %vm149_vm0, %v146_v1  ;;  %263 = vst.msk [vmem:[%s142_s30 + $0x2] sm:$0x3] %vm149_vm0, %v146_v1  ;;  %s449_s9 = smov [#allocation5]   ;;  %s545_s2 = int_to_ptr.vmem [resolvable:$true] %s173_s2 }
  0x28   : > { %s366_s13 = scalar_lea.vmem %s545_s2, 64  ;;  %s370_s15 = sshll.u32 %s449_s9, 4  ;;  %s371_s15 = int_to_ptr.vmem [resolvable:$false] %s370_s15 }
  0x29   : > { %p367_p10 = scmp.ne.s32.totalorder %s545_s2, %s366_s13  ;;  %s372_s17 = scalar_lea.vmem %s371_s15, 128 }
  0x2a   : > { %p373_p13 = scmp.lt.s32.totalorder %s545_s2, %s371_s15  ;;  %p374_p0 = scmp.lt.s32.totalorder %s372_s17, %s366_s13 }
  0x2b   : > { %p368_p11 = pnand %p367_p10, %p502_p4 }
  0x2c   : > { %p375_p1 = por %p374_p0, %p373_p13 }
  0x2d   : > { %p369_p12 = pneg %p368_p11 }
  0x2f   : > { %p376_p2 = pnand %p375_p1, %p369_p12 }
  0x31   : > { %379 = shalt.err (!%p376_p2)
}
  0x32   : > { %s380_s20 = scalar_lea.hbm %s543_s5, 64  ;;  %s384_s23 = scalar_lea.hbm %s593_s1, 128 }
  0x33   : > { %p381_p3 = scmp.ne.s32.totalorder %s543_s5, %s380_s20  ;;  %p385_p7 = scmp.lt.s32.totalorder %s543_s5, %s593_s1 }
  0x34   : > { %p386_p9 = scmp.lt.s32.totalorder %s384_s23, %s380_s20 }
  0x35   : > { %p382_p5 = pnand %p381_p3, %p502_p4 }
  0x36   : > { %p387_p10 = por %p386_p9, %p385_p7 }
  0x37   : > { %p383_p6 = pneg %p382_p5 }
  0x39   : > { %p388_p11 = pnand %p387_p10, %p383_p6 }
  0x3b   : > { %391 = shalt.err (!%p388_p11)
}
  0x3c   : > { %s450_s26 = smov 32   ;;  %s451_s27 = smov 2  }
  0x3d   : > { %276 = dma.vmem_to_hbm [thread:$0]  (%p502_p4), %s545_s2, 64, %s543_s5, %s547_s12, %s450_s26, %s450_s26, %s451_s27  }
  0x3e PF: > { %p288_p12 = scmp.ge.s32.totalorder %s446_s11, 2  ;;  %s188_s28 = sand.u32 1, %s426_s6  }
  0x3f   : > { %s189_s29 = scalar_lea.sflag [#allocation4], %s188_s28 }
  0x40   : > { %p283_p13 = pnand %p288_p12, %p509_p8 }
  0x42   : > { %p284_p0 = pneg %p283_p13 }
  0x44   : > { %421 = dma.done.wait (%p284_p0), %s189_s29, 64  }
  0x45   : > { %423 = vsyncadd (%p284_p0), %s189_s29, 4294967232  ;;  %s15_s11 = sadd.s32 1, %s446_s11   ;;  %s598_s6 = smov %s430_s7 }
  0x46   : > { %p12_p1 = scmp.ge.s32.totalorder %s15_s11, 4   ;;  %s599_s7 = smov %s434_s8 }
  0x47   : > { %s600_s8 = smov %s515_s19  ;;  %s601_s9 = smov %s442_s10 }
  0x48   : > { %s602_s10 = smov %s604_s14  ;;  %14 = sbr.rel (!%p12_p1) target bundleno = 5 (0x5), region = 63 }
  0x4d   :  { %194 = vsyncpa [#allocation3], 1 }
  0x4e   :  { %196 = vsyncpa [#allocation3 + $0x1], 1 }
  0x4f   :  { %197 = vsyncpa [#allocation4], 1 }
  0x50   :  { %199 = vsyncpa [#allocation4 + $0x1], 1 }

</bundles_post_ra>
